<compile_context>
chip_gen: v7x
topology: tpu7x:2x2x1
jax: 0.10.0
libtpu: 0.0.40
codegen_flags: <defaults>
</compile_context>

<pallas_src>
import functools

import jax
import jax.numpy as jnp
from jax.experimental import pallas as pl
from jax.experimental.pallas import tpu as pltpu


def _round_up(a, m):
    return (a + m - 1) // m * m


# --------------------------------------------------------------------------- #
# Kernel
# --------------------------------------------------------------------------- #
def vae_fused_kernel(x_ref,
                     we1, be1, we2, be2,          # encoder (Linear+ReLU)
                     whead, bhead,                # fused (we3-folded) mu||log_sigma head
                     eps_ref,                     # N(0,1) noise, f32
                     wd1, bd1, wd2, bd2, wd3, bd3,  # decoder (Linear+ReLU, linear head)
                     packed_ref,                  # [recon | mu | sigma | zero pad], f32
                     *, latent_dim, pad_cols):
    def dense(a, w_ref, b_ref, relu):
        # bf16 x bf16 -> f32 accumulate on the MXU; bias/ReLU in f32 on the VPU.
        y = jnp.dot(a.astype(jnp.bfloat16), w_ref[...],
                    preferred_element_type=jnp.float32) + b_ref[...]
        return jnp.maximum(y, 0.0) if relu else y

    x = x_ref[...]                                    # (tile_b, in_feat), bf16

    # ---------------- Encoder MLP ----------------
    h = dense(x, we1, be1, relu=True)
    h = dense(h, we2, be2, relu=True)

    # -------- Fused latent heads (we3/be3 folded in offline) --------
    heads = dense(h, whead, bhead, relu=False)        # (tile_b, 2*latent), f32
    mu = heads[:, :latent_dim]
    log_sigma = heads[:, latent_dim:2 * latent_dim]
    sigma = jnp.exp(log_sigma)                        # EUP, f32
    z = mu + sigma * eps_ref[...]                     # reparameterization, f32

    # ---------------- Decoder MLP ----------------
    d = dense(z, wd1, bd1, relu=True)
    d = dense(d, wd2, bd2, relu=True)
    out = dense(d, wd3, bd3, relu=False)

    # ------------- Lane-dense packed store -------------
    parts = [out, mu, sigma]
    if pad_cols:
        parts.append(jnp.zeros((out.shape[0], pad_cols), jnp.float32))
    packed_ref[...] = jnp.concatenate(parts, axis=-1)


# --------------------------------------------------------------------------- #
# Parameters
# --------------------------------------------------------------------------- #
def make_params(key, in_feat, hidden, hidden2, out_dim, latent):
    """Deterministic init. Weights stored as (in, out) so x @ W + b matches
    PyTorch's x @ W.T + b with W:(out, in)."""
    dims = [
        ("we1", (in_feat, hidden)), ("be1", (1, hidden)),
        ("we2", (hidden, hidden2)), ("be2", (1, hidden2)),
        ("we3", (hidden2, out_dim)), ("be3", (1, out_dim)),
        ("wmu", (out_dim, latent)), ("bmu", (1, latent)),
        ("wls", (out_dim, latent)), ("bls", (1, latent)),
        ("wd1", (latent, hidden2)), ("bd1", (1, hidden2)),
        ("wd2", (hidden2, hidden)), ("bd2", (1, hidden)),
        ("wd3", (hidden, in_feat)), ("bd3", (1, in_feat)),
    ]
    keys = jax.random.split(key, len(dims))
    params = {}
    for k, (name, shape) in zip(keys, dims):
        fan_in = shape[0] if shape[0] > 1 else shape[-1]
        scale = 1.0 / jnp.sqrt(jnp.float32(fan_in))
        params[name] = jax.random.uniform(k, shape, jnp.float32, -1.0, 1.0) * scale
    return params


def prepare_kernel_params(p):
    """Fold we3/be3 into the latent heads (valid: no nonlinearity in between),
    fuse the mu / log_sigma heads into one weight, and cast weights to bf16."""
    wmu_f = p["we3"] @ p["wmu"]
    bmu_f = p["be3"] @ p["wmu"] + p["bmu"]
    wls_f = p["we3"] @ p["wls"]
    bls_f = p["be3"] @ p["wls"] + p["bls"]
    whead = jnp.concatenate([wmu_f, wls_f], axis=1)        # (hidden2, 2*latent)
    bhead = jnp.concatenate([bmu_f, bls_f], axis=1)        # (1, 2*latent)

    bf = lambda a: a.astype(jnp.bfloat16)
    return dict(
        we1=bf(p["we1"]), be1=p["be1"],
        we2=bf(p["we2"]), be2=p["be2"],
        whead=bf(whead), bhead=bhead,
        wd1=bf(p["wd1"]), bd1=p["bd1"],
        wd2=bf(p["wd2"]), bd2=p["bd2"],
        wd3=bf(p["wd3"]), bd3=p["bd3"],
    )


# --------------------------------------------------------------------------- #
# Wrapper
# --------------------------------------------------------------------------- #
def vae_forward(x, eps, kp, latent_dim, *, tile_b=512):
    B, in_feat = x.shape

    # Batch tile: multiple of 16 (bf16 sublane packing), capped at 512 rows so a
    # double-buffered tile + resident weights stays well under v7x's 64 MiB VMEM.
    tile_b = min(tile_b, _round_up(B, 16))
    tile_b = _round_up(tile_b, 16)
    Bp = _round_up(B, tile_b)

    padw = _round_up(in_feat + 2 * latent_dim, 128)        # lane-dense output width
    pad_cols = padw - (in_feat + 2 * latent_dim)

    xb = x.astype(jnp.bfloat16)
    eps_p = eps
    if Bp != B:
        xb = jnp.pad(xb, ((0, Bp - B), (0, 0)))
        eps_p = jnp.pad(eps_p, ((0, Bp - B), (0, 0)))

    enc_w = [kp["we1"], kp["be1"], kp["we2"], kp["be2"], kp["whead"], kp["bhead"]]
    dec_w = [kp["wd1"], kp["bd1"], kp["wd2"], kp["bd2"], kp["wd3"], kp["bd3"]]
    args = [xb] + enc_w + [eps_p] + dec_w

    def resident(a):  # full array in VMEM, same block every grid step
        return pl.BlockSpec(a.shape, lambda i: (0, 0))

    in_specs = ([pl.BlockSpec((tile_b, in_feat), lambda i: (i, 0))]
                + [resident(w) for w in enc_w]
                + [pl.BlockSpec((tile_b, latent_dim), lambda i: (i, 0))]
                + [resident(w) for w in dec_w])

    kernel = functools.partial(vae_fused_kernel,
                               latent_dim=latent_dim, pad_cols=pad_cols)

    packed = pl.pallas_call(
        kernel,
        out_shape=jax.ShapeDtypeStruct((Bp, padw), jnp.float32),
        grid=(Bp // tile_b,),
        in_specs=in_specs,
        out_specs=pl.BlockSpec((tile_b, padw), lambda i: (i, 0)),
        compiler_params=pltpu.CompilerParams(
            dimension_semantics=("parallel",)),   # shards batch across v7x's 2 TCs
    )(*args)

    out = packed[:B, :in_feat]
    mu = packed[:B, in_feat:in_feat + latent_dim]
    sigma = packed[:B, in_feat + latent_dim:in_feat + 2 * latent_dim]
    return out, mu, sigma


# --------------------------------------------------------------------------- #
# Pure-JAX f32 reference (original, unfused module math)
# --------------------------------------------------------------------------- #
def vae_forward_ref(x, eps, p):
    h = jnp.maximum(x @ p["we1"] + p["be1"], 0.0)
    h = jnp.maximum(h @ p["we2"] + p["be2"], 0.0)
    enc = h @ p["we3"] + p["be3"]
    mu = enc @ p["wmu"] + p["bmu"]
    sigma = jnp.exp(enc @ p["wls"] + p["bls"])
    z = mu + sigma * eps
    d = jnp.maximum(z @ p["wd1"] + p["bd1"], 0.0)
    d = jnp.maximum(d @ p["wd2"] + p["bd2"], 0.0)
    return d @ p["wd3"] + p["bd3"], mu, sigma


if __name__ == "__main__":
    # Small, module-consistent sizes: x is (batch, input_dim * channels).
    batch = 8
    input_dim = 16
    channels = 4
    hidden_dim = 64
    hidden_dim2 = 32
    output_dim = 32
    latent_dim = 16
    in_feat = input_dim * channels  # 64

    key = jax.random.PRNGKey(0)
    kx, keps, kp = jax.random.split(key, 3)

    x = jax.random.normal(kx, (batch, in_feat), jnp.float32)
    eps = jax.random.normal(keps, (batch, latent_dim), jnp.float32)

    params = make_params(kp, in_feat, hidden_dim, hidden_dim2, output_dim, latent_dim)
    kparams = prepare_kernel_params(params)

    out, mu, sigma = vae_forward(x, eps, kparams, latent_dim)
    jax.block_until_ready((out, mu, sigma))

    ref_out, ref_mu, ref_sigma = vae_forward_ref(x, eps, params)

    # Kernel runs weights/activations in bf16 (f32 accumulation) while the
    # reference is pure f32, so tolerance is bf16-scale.
    assert out.shape == (batch, in_feat)
    assert mu.shape == (batch, latent_dim) and sigma.shape == (batch, latent_dim)
    assert jnp.allclose(out, ref_out, atol=5e-2, rtol=5e-2)
    assert jnp.allclose(mu, ref_mu, atol=5e-2, rtol=5e-2)
    assert jnp.allclose(sigma, ref_sigma, atol=5e-2, rtol=5e-2)

    print("KERNEL_OK")
</pallas_src>

<mosaic_0001>
module attributes {stable_mosaic.version = 11 : i64} {
  func.func @vae_fused_kernel(%arg0: i32, %arg1: memref<16x64xbf16, #tpu.memory_space<vmem>>, %arg2: memref<64x64xbf16, #tpu.memory_space<vmem>>, %arg3: memref<1x64xf32, #tpu.memory_space<vmem>>, %arg4: memref<64x32xbf16, #tpu.memory_space<vmem>>, %arg5: memref<1x32xf32, #tpu.memory_space<vmem>>, %arg6: memref<32x32xbf16, #tpu.memory_space<vmem>>, %arg7: memref<1x32xf32, #tpu.memory_space<vmem>>, %arg8: memref<16x16xf32, #tpu.memory_space<vmem>>, %arg9: memref<16x32xbf16, #tpu.memory_space<vmem>>, %arg10: memref<1x32xf32, #tpu.memory_space<vmem>>, %arg11: memref<32x64xbf16, #tpu.memory_space<vmem>>, %arg12: memref<1x64xf32, #tpu.memory_space<vmem>>, %arg13: memref<64x64xbf16, #tpu.memory_space<vmem>>, %arg14: memref<1x64xf32, #tpu.memory_space<vmem>>, %arg15: memref<16x128xf32, #tpu.memory_space<vmem>>) attributes {dimension_semantics = [#tpu.dimension_semantics<parallel>], iteration_bounds = array<i64: 1>, scalar_prefetch = 0 : i64, scratch_operands = 0 : i64, tpu.core_type = #tpu.core_type<tc>, window_params = [{transform_indices = @transform_0, window_bounds = array<i64: 16, 64>}, {pipeline_mode = #tpu.pipeline_mode<synchronous>, transform_indices = @transform_1, window_bounds = array<i64: 64, 64>}, {pipeline_mode = #tpu.pipeline_mode<synchronous>, transform_indices = @transform_2, window_bounds = array<i64: 1, 64>}, {pipeline_mode = #tpu.pipeline_mode<synchronous>, transform_indices = @transform_3, window_bounds = array<i64: 64, 32>}, {pipeline_mode = #tpu.pipeline_mode<synchronous>, transform_indices = @transform_4, window_bounds = array<i64: 1, 32>}, {pipeline_mode = #tpu.pipeline_mode<synchronous>, transform_indices = @transform_5, window_bounds = array<i64: 32, 32>}, {pipeline_mode = #tpu.pipeline_mode<synchronous>, transform_indices = @transform_6, window_bounds = array<i64: 1, 32>}, {transform_indices = @transform_7, window_bounds = array<i64: 16, 16>}, {pipeline_mode = #tpu.pipeline_mode<synchronous>, transform_indices = @transform_8, window_bounds = array<i64: 16, 32>}, {pipeline_mode = #tpu.pipeline_mode<synchronous>, transform_indices = @transform_9, window_bounds = array<i64: 1, 32>}, {pipeline_mode = #tpu.pipeline_mode<synchronous>, transform_indices = @transform_10, window_bounds = array<i64: 32, 64>}, {pipeline_mode = #tpu.pipeline_mode<synchronous>, transform_indices = @transform_11, window_bounds = array<i64: 1, 64>}, {pipeline_mode = #tpu.pipeline_mode<synchronous>, transform_indices = @transform_12, window_bounds = array<i64: 64, 64>}, {pipeline_mode = #tpu.pipeline_mode<synchronous>, transform_indices = @transform_13, window_bounds = array<i64: 1, 64>}, {transform_indices = @transform_14, window_bounds = array<i64: 16, 128>}]} {
    %c0 = arith.constant 0 : index
    %c0_0 = arith.constant 0 : index
    %0 = vector.load %arg1[%c0, %c0_0] : memref<16x64xbf16, #tpu.memory_space<vmem>>, vector<16x64xbf16>
    %c0_1 = arith.constant 0 : index
    %c0_2 = arith.constant 0 : index
    %1 = vector.load %arg2[%c0_1, %c0_2] : memref<64x64xbf16, #tpu.memory_space<vmem>>, vector<64x64xbf16>
    %cst = arith.constant dense<0.000000e+00> : vector<16x64xf32>
    %2 = tpu.matmul %0, %1, %cst {dimension_numbers = #tpu.dot_dimension_numbers<[1], [0], [0], [1], [0, 0, 1, 1], [], []>} : vector<16x64xbf16>, vector<64x64xbf16>, vector<16x64xf32> -> vector<16x64xf32>
    %c0_3 = arith.constant 0 : index
    %c0_4 = arith.constant 0 : index
    %3 = vector.load %arg3[%c0_3, %c0_4] : memref<1x64xf32, #tpu.memory_space<vmem>>, vector<1x64xf32>
    %4 = vector.broadcast %3 : vector<1x64xf32> to vector<16x64xf32>
    %5 = arith.addf %2, %4 : vector<16x64xf32>
    %cst_5 = arith.constant 0.000000e+00 : f32
    %6 = vector.broadcast %cst_5 : f32 to vector<16x64xf32>
    %7 = arith.maximumf %5, %6 : vector<16x64xf32>
    %8 = arith.truncf %7 : vector<16x64xf32> to vector<16x64xbf16>
    %c0_6 = arith.constant 0 : index
    %c0_7 = arith.constant 0 : index
    %9 = vector.load %arg4[%c0_6, %c0_7] : memref<64x32xbf16, #tpu.memory_space<vmem>>, vector<64x32xbf16>
    %cst_8 = arith.constant dense<0.000000e+00> : vector<16x32xf32>
    %10 = tpu.matmul %8, %9, %cst_8 {dimension_numbers = #tpu.dot_dimension_numbers<[1], [0], [0], [1], [0, 0, 1, 1], [], []>} : vector<16x64xbf16>, vector<64x32xbf16>, vector<16x32xf32> -> vector<16x32xf32>
    %c0_9 = arith.constant 0 : index
    %c0_10 = arith.constant 0 : index
    %11 = vector.load %arg5[%c0_9, %c0_10] : memref<1x32xf32, #tpu.memory_space<vmem>>, vector<1x32xf32>
    %12 = vector.broadcast %11 : vector<1x32xf32> to vector<16x32xf32>
    %13 = arith.addf %10, %12 : vector<16x32xf32>
    %cst_11 = arith.constant 0.000000e+00 : f32
    %14 = vector.broadcast %cst_11 : f32 to vector<16x32xf32>
    %15 = arith.maximumf %13, %14 : vector<16x32xf32>
    %16 = arith.truncf %15 : vector<16x32xf32> to vector<16x32xbf16>
    %c0_12 = arith.constant 0 : index
    %c0_13 = arith.constant 0 : index
    %17 = vector.load %arg6[%c0_12, %c0_13] : memref<32x32xbf16, #tpu.memory_space<vmem>>, vector<32x32xbf16>
    %cst_14 = arith.constant dense<0.000000e+00> : vector<16x32xf32>
    %18 = tpu.matmul %16, %17, %cst_14 {dimension_numbers = #tpu.dot_dimension_numbers<[1], [0], [0], [1], [0, 0, 1, 1], [], []>} : vector<16x32xbf16>, vector<32x32xbf16>, vector<16x32xf32> -> vector<16x32xf32>
    %c0_15 = arith.constant 0 : index
    %c0_16 = arith.constant 0 : index
    %19 = vector.load %arg7[%c0_15, %c0_16] : memref<1x32xf32, #tpu.memory_space<vmem>>, vector<1x32xf32>
    %20 = vector.broadcast %19 : vector<1x32xf32> to vector<16x32xf32>
    %21 = arith.addf %18, %20 : vector<16x32xf32>
    %22 = vector.extract_strided_slice %21 {offsets = [0, 0], sizes = [16, 16], strides = [1, 1]} : vector<16x32xf32> to vector<16x16xf32>
    %23 = vector.extract_strided_slice %21 {offsets = [0, 16], sizes = [16, 16], strides = [1, 1]} : vector<16x32xf32> to vector<16x16xf32>
    %24 = math.exp %23 : vector<16x16xf32>
    %c0_17 = arith.constant 0 : index
    %c0_18 = arith.constant 0 : index
    %25 = vector.load %arg8[%c0_17, %c0_18] : memref<16x16xf32, #tpu.memory_space<vmem>>, vector<16x16xf32>
    %26 = arith.mulf %24, %25 : vector<16x16xf32>
    %27 = arith.addf %22, %26 : vector<16x16xf32>
    %28 = arith.truncf %27 : vector<16x16xf32> to vector<16x16xbf16>
    %c0_19 = arith.constant 0 : index
    %c0_20 = arith.constant 0 : index
    %29 = vector.load %arg9[%c0_19, %c0_20] : memref<16x32xbf16, #tpu.memory_space<vmem>>, vector<16x32xbf16>
    %cst_21 = arith.constant dense<0.000000e+00> : vector<16x32xf32>
    %30 = tpu.matmul %28, %29, %cst_21 {dimension_numbers = #tpu.dot_dimension_numbers<[1], [0], [0], [1], [0, 0, 1, 1], [], []>} : vector<16x16xbf16>, vector<16x32xbf16>, vector<16x32xf32> -> vector<16x32xf32>
    %c0_22 = arith.constant 0 : index
    %c0_23 = arith.constant 0 : index
    %31 = vector.load %arg10[%c0_22, %c0_23] : memref<1x32xf32, #tpu.memory_space<vmem>>, vector<1x32xf32>
    %32 = vector.broadcast %31 : vector<1x32xf32> to vector<16x32xf32>
    %33 = arith.addf %30, %32 : vector<16x32xf32>
    %cst_24 = arith.constant 0.000000e+00 : f32
    %34 = vector.broadcast %cst_24 : f32 to vector<16x32xf32>
    %35 = arith.maximumf %33, %34 : vector<16x32xf32>
    %36 = arith.truncf %35 : vector<16x32xf32> to vector<16x32xbf16>
    %c0_25 = arith.constant 0 : index
    %c0_26 = arith.constant 0 : index
    %37 = vector.load %arg11[%c0_25, %c0_26] : memref<32x64xbf16, #tpu.memory_space<vmem>>, vector<32x64xbf16>
    %cst_27 = arith.constant dense<0.000000e+00> : vector<16x64xf32>
    %38 = tpu.matmul %36, %37, %cst_27 {dimension_numbers = #tpu.dot_dimension_numbers<[1], [0], [0], [1], [0, 0, 1, 1], [], []>} : vector<16x32xbf16>, vector<32x64xbf16>, vector<16x64xf32> -> vector<16x64xf32>
    %c0_28 = arith.constant 0 : index
    %c0_29 = arith.constant 0 : index
    %39 = vector.load %arg12[%c0_28, %c0_29] : memref<1x64xf32, #tpu.memory_space<vmem>>, vector<1x64xf32>
    %40 = vector.broadcast %39 : vector<1x64xf32> to vector<16x64xf32>
    %41 = arith.addf %38, %40 : vector<16x64xf32>
    %cst_30 = arith.constant 0.000000e+00 : f32
    %42 = vector.broadcast %cst_30 : f32 to vector<16x64xf32>
    %43 = arith.maximumf %41, %42 : vector<16x64xf32>
    %44 = arith.truncf %43 : vector<16x64xf32> to vector<16x64xbf16>
    %c0_31 = arith.constant 0 : index
    %c0_32 = arith.constant 0 : index
    %45 = vector.load %arg13[%c0_31, %c0_32] : memref<64x64xbf16, #tpu.memory_space<vmem>>, vector<64x64xbf16>
    %cst_33 = arith.constant dense<0.000000e+00> : vector<16x64xf32>
    %46 = tpu.matmul %44, %45, %cst_33 {dimension_numbers = #tpu.dot_dimension_numbers<[1], [0], [0], [1], [0, 0, 1, 1], [], []>} : vector<16x64xbf16>, vector<64x64xbf16>, vector<16x64xf32> -> vector<16x64xf32>
    %c0_34 = arith.constant 0 : index
    %c0_35 = arith.constant 0 : index
    %47 = vector.load %arg14[%c0_34, %c0_35] : memref<1x64xf32, #tpu.memory_space<vmem>>, vector<1x64xf32>
    %48 = vector.broadcast %47 : vector<1x64xf32> to vector<16x64xf32>
    %49 = arith.addf %46, %48 : vector<16x64xf32>
    %cst_36 = arith.constant 0.000000e+00 : f32
    %50 = vector.broadcast %cst_36 : f32 to vector<16x32xf32>
    %51 = tpu.concatenate %49, %22, %24, %50 in 1 : vector<16x64xf32>, vector<16x16xf32>, vector<16x16xf32>, vector<16x32xf32> -> vector<16x128xf32>
    %c0_37 = arith.constant 0 : index
    %c0_38 = arith.constant 0 : index
    %52 = vector.load %arg15[%c0_37, %c0_38] : memref<16x128xf32, #tpu.memory_space<vmem>>, vector<16x128xf32>
    tpu.vector_store %arg15[%c0_37, %c0_38], %51 {strides = array<i32>} : memref<16x128xf32, #tpu.memory_space<vmem>>, vector<16x128xf32>,
    return
  }
  func.func @transform_0(%arg0: i32) -> (i32, i32) {
    %c0_i32 = arith.constant 0 : i32
    %c0_i32_0 = arith.constant 0 : i32
    return %arg0, %c0_i32 : i32, i32
  }
  func.func @transform_1(%arg0: i32) -> (i32, i32) {
    %c0_i32 = arith.constant 0 : i32
    %c0_i32_0 = arith.constant 0 : i32
    %c0_i32_1 = arith.constant 0 : i32
    return %c0_i32, %c0_i32_0 : i32, i32
  }
  func.func @transform_2(%arg0: i32) -> (i32, i32) {
    %c0_i32 = arith.constant 0 : i32
    %c0_i32_0 = arith.constant 0 : i32
    %c0_i32_1 = arith.constant 0 : i32
    return %c0_i32, %c0_i32_0 : i32, i32
  }
  func.func @transform_3(%arg0: i32) -> (i32, i32) {
    %c0_i32 = arith.constant 0 : i32
    %c0_i32_0 = arith.constant 0 : i32
    %c0_i32_1 = arith.constant 0 : i32
    return %c0_i32, %c0_i32_0 : i32, i32
  }
  func.func @transform_4(%arg0: i32) -> (i32, i32) {
    %c0_i32 = arith.constant 0 : i32
    %c0_i32_0 = arith.constant 0 : i32
    %c0_i32_1 = arith.constant 0 : i32
    return %c0_i32, %c0_i32_0 : i32, i32
  }
  func.func @transform_5(%arg0: i32) -> (i32, i32) {
    %c0_i32 = arith.constant 0 : i32
    %c0_i32_0 = arith.constant 0 : i32
    %c0_i32_1 = arith.constant 0 : i32
    return %c0_i32, %c0_i32_0 : i32, i32
  }
  func.func @transform_6(%arg0: i32) -> (i32, i32) {
    %c0_i32 = arith.constant 0 : i32
    %c0_i32_0 = arith.constant 0 : i32
    %c0_i32_1 = arith.constant 0 : i32
    return %c0_i32, %c0_i32_0 : i32, i32
  }
  func.func @transform_7(%arg0: i32) -> (i32, i32) {
    %c0_i32 = arith.constant 0 : i32
    %c0_i32_0 = arith.constant 0 : i32
    return %arg0, %c0_i32 : i32, i32
  }
  func.func @transform_8(%arg0: i32) -> (i32, i32) {
    %c0_i32 = arith.constant 0 : i32
    %c0_i32_0 = arith.constant 0 : i32
    %c0_i32_1 = arith.constant 0 : i32
    return %c0_i32, %c0_i32_0 : i32, i32
  }
  func.func @transform_9(%arg0: i32) -> (i32, i32) {
    %c0_i32 = arith.constant 0 : i32
    %c0_i32_0 = arith.constant 0 : i32
    %c0_i32_1 = arith.constant 0 : i32
    return %c0_i32, %c0_i32_0 : i32, i32
  }
  func.func @transform_10(%arg0: i32) -> (i32, i32) {
    %c0_i32 = arith.constant 0 : i32
    %c0_i32_0 = arith.constant 0 : i32
    %c0_i32_1 = arith.constant 0 : i32
    return %c0_i32, %c0_i32_0 : i32, i32
  }
  func.func @transform_11(%arg0: i32) -> (i32, i32) {
    %c0_i32 = arith.constant 0 : i32
    %c0_i32_0 = arith.constant 0 : i32
    %c0_i32_1 = arith.constant 0 : i32
    return %c0_i32, %c0_i32_0 : i32, i32
  }
  func.func @transform_12(%arg0: i32) -> (i32, i32) {
    %c0_i32 = arith.constant 0 : i32
    %c0_i32_0 = arith.constant 0 : i32
    %c0_i32_1 = arith.constant 0 : i32
    return %c0_i32, %c0_i32_0 : i32, i32
  }
  func.func @transform_13(%arg0: i32) -> (i32, i32) {
    %c0_i32 = arith.constant 0 : i32
    %c0_i32_0 = arith.constant 0 : i32
    %c0_i32_1 = arith.constant 0 : i32
    return %c0_i32, %c0_i32_0 : i32, i32
  }
  func.func @transform_14(%arg0: i32) -> (i32, i32) {
    %c0_i32 = arith.constant 0 : i32
    %c0_i32_0 = arith.constant 0 : i32
    return %arg0, %c0_i32 : i32, i32
  }
}

</mosaic_0001>

<bundles_post_ra>
// kernel: tpu_custom_call.1
= control target key start
LH: loop header
LB: loop body
LE: loop exit
PB: predicated region body
PF: predicated region fallthrough
CT: control target
= control target key end

     0   :  { %19 = vsyncpa [#allocation3], 0  ;;  %s1266_s0 = inlined_call_operand.hbm [shape: bf16[16,64], index: 0, kind: input, shape index: {}]   ;;  %s1267_s1 = inlined_call_operand.vmem [shape: bf16[64,64], index: 1, kind: input, shape index: {}]   ;;  %s1268_s2 = inlined_call_operand.vmem [shape: f32[1,64], index: 2, kind: input, shape index: {}]   ;;  %s1269_s3 = inlined_call_operand.vmem [shape: bf16[64,32], index: 3, kind: input, shape index: {}]   ;;  %s1270_s4 = inlined_call_operand.vmem [shape: f32[1,32], index: 4, kind: input, shape index: {}]   ;;  %s1271_s5 = inlined_call_operand.hbm [shape: bf16[32,32], index: 5, kind: input, shape index: {}]   ;;  %s1272_s6 = inlined_call_operand.hbm [shape: f32[1,32], index: 6, kind: input, shape index: {}]   ;;  %s1273_s7 = inlined_call_operand.hbm [shape: f32[16,16], index: 7, kind: input, shape index: {}]   ;;  %s1274_s8 = inlined_call_operand.hbm [shape: bf16[16,32], index: 8, kind: input, shape index: {}]   ;;  %s1275_s9 = inlined_call_operand.hbm [shape: f32[1,32], index: 9, kind: input, shape index: {}]   ;;  %s1276_s10 = inlined_call_operand.vmem [shape: bf16[32,64], index: 10, kind: input, shape index: {}]   ;;  %s1277_s11 = inlined_call_operand.vmem [shape: f32[1,64], index: 11, kind: input, shape index: {}]   ;;  %s1278_s12 = inlined_call_operand.vmem [shape: bf16[64,64], index: 12, kind: input, shape index: {}]   ;;  %s1279_s13 = inlined_call_operand.vmem [shape: f32[1,64], index: 13, kind: input, shape index: {}]   ;;  %s1280_s14 = inlined_call_operand.hbm [shape: f32[16,128], index: 14, kind: output, shape index: {}]  }
   0x1   :  { %20 = vsyncpa [#allocation6], 0 }
   0x2   :  { %21 = vsyncpa [#allocation9], 0 }
   0x3   :  { %22 = vsyncpa [#allocation12], 0 }
   0x4   :  { %23 = vsyncpa [#allocation4], 0  ;;  %s976_s29 = smov [#allocation5]   ;;  %s977_s15 = smov [#allocation8]  }
   0x5   :  { %s49_s30 = sshll.u32 %s976_s29, 4  ;;  %s71_s16 = sshll.u32 %s977_s15, 4  ;;  %s50_s30 = int_to_ptr.vmem [resolvable:$true] %s49_s30  ;;  %s1066_s16 = int_to_ptr.vmem [resolvable:$true] %s71_s16 }
   0x6   :  { %s812_s19 = scalar_lea.hbm %s1271_s5, 256 }
   0x7   :  { %p813_p0 = scmp.ne.s32.totalorder %s1271_s5, %s812_s19  ;;  %p816_p1 = scmp.lt.u32.totalorder %s812_s19, %s1271_s5 }
   0x9   :  { %p818_p2 = pnand %p816_p1, %p813_p0 }
   0xb   :  { %821 = shalt.err (!%p818_p2)
}
   0xc   :  { %s822_s24 = scalar_lea.vmem %s50_s30, 256  ;;  %p827_p4 = scmp.lt.s32.totalorder %s50_s30, %s50_s30 }
   0xd   :  { %p823_p3 = scmp.ne.s32.totalorder %s50_s30, %s822_s24  ;;  %p828_p5 = scmp.lt.s32.totalorder %s822_s24, %s822_s24 }
   0xf   :  { %p829_p6 = por %p828_p5, %p827_p4 }
  0x11   :  { %p830_p7 = pnand %p829_p6, %p823_p3 }
  0x13   :  { %833 = shalt.err (!%p830_p7)
}
  0x14   :  { %s1281_s25 = smov 64   ;;  %s979_s26 = smov 4  }
  0x15   :  { %55 = dma.hbm_to_vmem [thread:$0]  %s1271_s5, 256, %s50_s30, [#allocation6], %s1281_s25, %s1281_s25, %s979_s26  }
  0x16   :  { %s834_s17 = scalar_lea.hbm %s1273_s7, 256 }
  0x17   :  { %p835_p8 = scmp.ne.s32.totalorder %s1273_s7, %s834_s17  ;;  %p838_p9 = scmp.lt.u32.totalorder %s834_s17, %s1273_s7 }
  0x19   :  { %p840_p10 = pnand %p838_p9, %p835_p8 }
  0x1b   :  { %843 = shalt.err (!%p840_p10)
}
  0x1c   :  { %s844_s22 = scalar_lea.vmem %s1066_s16, 256  ;;  %p849_p12 = scmp.lt.s32.totalorder %s1066_s16, %s1066_s16 }
  0x1d   :  { %p845_p11 = scmp.ne.s32.totalorder %s1066_s16, %s844_s22  ;;  %p850_p13 = scmp.lt.s32.totalorder %s844_s22, %s844_s22 }
  0x1f   :  { %p851_p0 = por %p850_p13, %p849_p12 }
  0x21   :  { %p852_p1 = pnand %p851_p0, %p845_p11 }
  0x23   :  { %855 = shalt.err (!%p852_p1)
}
  0x24   :  { %s980_s5 = smov 128   ;;  %s981_s30 = smov 8  }
  0x25   :  { %77 = dma.hbm_to_vmem [thread:$0]  %s1273_s7, 256, %s1066_s16, [#allocation9], %s980_s5, %s980_s5, %s981_s30  }
  0x26   :  { %s982_s27 = smov [#allocation2]   ;;  %s983_s29 = smov [#allocation7]  }
  0x27   :  { %s29_s28 = sshll.u32 %s982_s27, 4  ;;  %s62_s15 = sshll.u32 %s983_s29, 4  ;;  %s30_s28 = int_to_ptr.vmem [resolvable:$true] %s29_s28  ;;  %s63_s15 = int_to_ptr.vmem [resolvable:$true] %s62_s15 }
  0x28   :  { %s856_s19 = scalar_lea.hbm %s1266_s0, 128 }
  0x29   :  { %p857_p2 = scmp.ne.s32.totalorder %s1266_s0, %s856_s19  ;;  %p860_p3 = scmp.lt.u32.totalorder %s856_s19, %s1266_s0 }
  0x2b   :  { %p862_p4 = pnand %p860_p3, %p857_p2 }
  0x2d   :  { %865 = shalt.err (!%p862_p4)
}
  0x2e   :  { %s866_s7 = scalar_lea.vmem %s30_s28, 128  ;;  %p871_p6 = scmp.lt.s32.totalorder %s30_s28, %s30_s28 }
  0x2f   :  { %p867_p5 = scmp.ne.s32.totalorder %s30_s28, %s866_s7  ;;  %p872_p7 = scmp.lt.s32.totalorder %s866_s7, %s866_s7 }
  0x31   :  { %p873_p8 = por %p872_p7, %p871_p6 }
  0x33   :  { %p874_p9 = pnand %p873_p8, %p867_p5 }
  0x35   :  { %877 = shalt.err (!%p874_p9)
}
  0x36   :  { %s1283_s16 = smov 64   ;;  %s878_s25 = scalar_lea.hbm %s1272_s6, 16 }
  0x37   :  { %35 = dma.hbm_to_vmem [thread:$0]  %s1266_s0, 128, %s30_s28, [#allocation3], %s1283_s16, %s1283_s16, %s979_s26  }
  0x38   :  { %p879_p10 = scmp.ne.s32.totalorder %s1272_s6, %s878_s25  ;;  %p882_p11 = scmp.lt.u32.totalorder %s878_s25, %s1272_s6 }
  0x3a   :  { %p884_p12 = pnand %p882_p11, %p879_p10 }
  0x3c   :  { %887 = shalt.err (!%p884_p12)
}
  0x3d   :  { %s888_s21 = scalar_lea.vmem %s63_s15, 16  ;;  %s892_s22 = scalar_lea.vmem %s63_s15, 32 }
  0x3e   :  { %p889_p13 = scmp.ne.s32.totalorder %s63_s15, %s888_s21  ;;  %p893_p0 = scmp.lt.s32.totalorder %s63_s15, %s63_s15 }
  0x3f   :  { %p894_p1 = scmp.lt.s32.totalorder %s892_s22, %s888_s21 }
  0x41   :  { %p895_p2 = por %p894_p1, %p893_p0 }
  0x43   :  { %p896_p3 = pnand %p895_p2, %p889_p13 }
  0x45   :  { %899 = shalt.err (!%p896_p3)
}
  0x46   :  { %65 = dma.hbm_to_vmem [thread:$0]  %s1272_s6, 16, %s63_s15, [#allocation6]  }
  0x47   :  { %s984_s7 = smov [#allocation10]   ;;  %s985_s24 = smov [#allocation11]  }
  0x48   :  { %s83_s23 = sshll.u32 %s984_s7, 4  ;;  %s96_s27 = sshll.u32 %s985_s24, 4  ;;  %s84_s23 = int_to_ptr.vmem [resolvable:$true] %s83_s23  ;;  %s97_s27 = int_to_ptr.vmem [resolvable:$true] %s96_s27 }
  0x49   :  { %s900_s17 = scalar_lea.hbm %s1274_s8, 128 }
  0x4a   :  { %p901_p4 = scmp.ne.s32.totalorder %s1274_s8, %s900_s17  ;;  %p904_p5 = scmp.lt.u32.totalorder %s900_s17, %s1274_s8 }
  0x4c   :  { %p906_p6 = pnand %p904_p5, %p901_p4 }
  0x4e   :  { %909 = shalt.err (!%p906_p6)
}
  0x4f   :  { %s910_s6 = scalar_lea.vmem %s84_s23, 128  ;;  %p915_p8 = scmp.lt.s32.totalorder %s84_s23, %s84_s23 }
  0x50   :  { %p911_p7 = scmp.ne.s32.totalorder %s84_s23, %s910_s6  ;;  %p916_p9 = scmp.lt.s32.totalorder %s910_s6, %s910_s6 }
  0x52   :  { %p917_p10 = por %p916_p9, %p915_p8 }
  0x54   :  { %p918_p11 = pnand %p917_p10, %p911_p7 }
  0x56   :  { %921 = shalt.err (!%p918_p11)
}
  0x57   :  { %89 = dma.hbm_to_vmem [thread:$0]  %s1274_s8, 128, %s84_s23, [#allocation9], %s1283_s16, %s1283_s16, %s979_s26  }
  0x58   :  { %s922_s7 = scalar_lea.hbm %s1275_s9, 16 }
  0x59   :  { %p923_p12 = scmp.ne.s32.totalorder %s1275_s9, %s922_s7  ;;  %p926_p13 = scmp.lt.u32.totalorder %s922_s7, %s1275_s9 }
  0x5b   :  { %p928_p0 = pnand %p926_p13, %p923_p12 }
  0x5d   :  { %931 = shalt.err (!%p928_p0)
}
  0x5e   :  { %s932_s18 = scalar_lea.vmem %s97_s27, 16  ;;  %s936_s19 = scalar_lea.vmem %s97_s27, 32 }
  0x5f   :  { %p933_p1 = scmp.ne.s32.totalorder %s97_s27, %s932_s18  ;;  %p937_p2 = scmp.lt.s32.totalorder %s97_s27, %s97_s27 }
  0x60   :  { %p938_p3 = scmp.lt.s32.totalorder %s936_s19, %s932_s18 }
  0x62   :  { %p939_p4 = por %p938_p3, %p937_p2 }
  0x64   :  { %p940_p5 = pnand %p939_p4, %p933_p1 }
  0x66   :  { %943 = shalt.err (!%p940_p5)
}
  0x67   :  { %99 = dma.hbm_to_vmem [thread:$0]  %s1275_s9, 16, %s97_s27, [#allocation12]  }
  0x68   :  { %966 = dma.done.wait [#allocation3], 128  }
  0x69   :  { %967 = vsyncadd [#allocation3], 4294967168 }
  0x6a   :  { %968 = dma.done.wait [#allocation6], 272  }
  0x6b   :  { %969 = vsyncadd [#allocation6], 4294967024 }
  0x6c   :  { %970 = dma.done.wait [#allocation9], 384  }
  0x6d   :  { %971 = vsyncadd [#allocation9], 4294966912 }
  0x6e   :  { %972 = dma.done.wait [#allocation12], 16  }
  0x6f   :  { %973 = vsyncadd [#allocation12], 4294967280  ;;  %v986_v0 = vmov 0.0   ;;  %vm987_vm0 = vmmov 0   ;;  %v790_v1 = vld [vmem:[%s1267_s1] sm:$0xff]   ;;  %v791_v2 = vld [vmem:[%s1267_s1 + $0x8] sm:$0xff]  }
  0x70   :  { %717 = vmatprep.subr.bf16.mxu0 %v986_v0  ;;  %725 = vmatprep.mubr.msk.bf16.mxu0 %vm987_vm0, %v986_v0  ;;  %v795_v3 = vld [vmem:[%s1269_s3] sm:$0xff]   ;;  %v792_v4 = vld [vmem:[%s1267_s1 + $0x10] sm:$0xff]   ;;  %v796_v5 = vld [vmem:[%s1269_s3 + $0x8] sm:$0xff]   ;;  %vm173_vm1 = vcmask 523264   ;;  %vm330_vm2 = vcmask 261120   ;;  %vm417_vm3 = vcmask 130048  }
  0x71   :  { %729 = vmatprep.subr.bf16.mxu1 %v986_v0  ;;  %737 = vmatprep.mubr.msk.bf16.mxu1 %vm987_vm0, %v986_v0  ;;  %v793_v6 = vld [vmem:[%s1267_s1 + $0x18] sm:$0xff]   ;;  %v794_v7 = vld [vmem:[#allocation2] sm:$0xff]   ;;  %v797_v8 = vld [vmem:[%s1269_s3 + $0x10] sm:$0xff]   ;;  %vm636_vm4 = vcmask 654336   ;;  %vm639_vm5 = vcmask 785408  }
  0x72   :  { %718 = vmatpush3.bf16.msra.mxu0 %v790_v1  ;;  %730 = vmatpush3.bf16.msra.mxu1 %v795_v3  ;;  %v798_v9 = vld [vmem:[%s1269_s3 + $0x18] sm:$0xff]   ;;  %v664_v10 = vld [vmem:[%s1268_s2] ss:$0 sm:$0xff]  ;;  %v799_v20 = vld [vmem:[#allocation5] sm:$0xff]   ;;  %s988_s2 = smov 16  }
  0x73   :  { %719 = vmatprep.subr.bf16.mxu0 %v986_v0  ;;  %731 = vmatprep.subr.bf16.mxu1 %v986_v0  ;;  %v800_v21 = vld [vmem:[#allocation5 + $0x8] sm:$0xff]   ;;  %v379_v22 = vld [vmem:[#allocation8] sm:$0xff]  ;;  %v380_v23 = vld [vmem:[#allocation8 + $0x8] sm:$0xff] }
  0x74   :  { %383 = vrot.lane.b32.xlu0 %v379_v22, %s988_s2  ;;  %v671_v24 = vld [vmem:[%s1270_s4] ss:$0 sm:$0xff]  ;;  %v677_v34 = vld [vmem:[#allocation7] ss:$0 sm:$0xff]  ;;  %v801_v43 = vld [vmem:[#allocation10] sm:$0xff]   ;;  %s989_s4 = smov 112  }
  0x75   :  { %v802_v55 = vld [vmem:[%s1276_s10] sm:$0xff]   ;;  %v803_v56 = vld [vmem:[%s1276_s10 + $0x8] sm:$0xff]   ;;  %v681_v59 = vld [vmem:[#allocation11] ss:$0 sm:$0xff] }
  0x76   :  { %720 = vmatpush3.bf16.msra.mxu0 %v791_v2  ;;  %732 = vmatpush3.bf16.msra.mxu1 %v796_v5  ;;  %v804_v57 = vld [vmem:[%s1278_s12] sm:$0xff]   ;;  %v805_v58 = vld [vmem:[%s1278_s12 + $0x8] sm:$0xff]  }
  0x77   :  { %721 = vmatprep.subr.bf16.mxu0 %v986_v0  ;;  %733 = vmatprep.subr.bf16.mxu1 %v986_v0 }
  0x78   :  { %385 = vrot.lane.b32.xlu0 %v380_v23, %s988_s2 }
  0x7a   :  { %722 = vmatpush3.bf16.msra.mxu0 %v792_v4  ;;  %734 = vmatpush3.bf16.msra.mxu1 %v797_v8  ;;  %v684_v8 = vld [vmem:[%s1277_s11] ss:$0 sm:$0xff]  ;;  %s990_s11 = smov [#allocation13]  }
  0x7b   :  { %723 = vmatprep.subr.bf16.mxu0 %v986_v0  ;;  %735 = vmatprep.subr.bf16.mxu1 %v986_v0 }
  0x7e   :  { %724 = vmatpush3.bf16.msra.mxu0 %v793_v6  ;;  %736 = vmatpush3.bf16.msra.mxu1 %v798_v9  ;;  %v806_v6 = vld [vmem:[%s1278_s12 + $0x10] sm:$0xff]  }
  0x7f   :  { %741 = vmatprep.subr.bf16.mxu0 %v986_v0  ;;  %749 = vmatprep.subr.bf16.mxu1 %v986_v0 }
  0x81   :  { %726 = vmatmul.mubr.msk.bf16.vlgmr.msra.gmra.mrb[0].mxu0 %vm173_vm1, %v794_v7  ;;  %v807_v7 = vld [vmem:[%s1278_s12 + $0x18] sm:$0xff]   ;;  %s649_s12 = sshll.u32 %s990_s11, 4  ;;  %s650_s12 = int_to_ptr.vmem [resolvable:$true] %s649_s12 }
  0x82   :  { %745 = vmatprep.mubr.msk.bf16.mxu0 %vm987_vm0, %v986_v0  ;;  %742 = vmatpush3.bf16.msra.mxu0 %v799_v20  ;;  %p949_p7 = scmp.lt.s32.totalorder %s650_s12, %s650_s12 }
  0x83   :  { %743 = vmatprep.subr.bf16.mxu0 %v986_v0 }
  0x86   :  { %744 = vmatpush3.bf16.msra.mxu0 %v800_v21 }
  0x87   :  { %755 = vmatprep.subr.bf16.mxu0 %v986_v0 }
  0xe6   :  { %v384_v44 = vpop.permute.xlu0 %383 }
  0xea   :  { %v386_v48 = vpop.permute.xlu0 %385 }
 0x154   :  { %v211_v11 = vpop.f32.mrb[0].mxu0 }
 0x155   :  { %v212_v12 = vadd.f32 %v664_v10, %v211_v11  ;;  %v727_v13 = vpop.f32.mrb[1].mxu0 }
 0x156   :  { %v214_v14 = vpop.f32.mrb[2].mxu0 }
 0x157   :  { %v215_v15 = vadd.f32 %v664_v10, %v214_v14  ;;  %v728_v16 = vpop.f32.mrb[3].mxu0  ;;  %v218_v17 = vmax.f32 %v212_v12, 0.0 }
 0x159   :  { %v219_v18 = vmax.f32 %v215_v15, 0.0 }
 0x15b   :  { %v220_v19 = vpack.c.bf16 %v219_v18, %v218_v17 }
 0x15d   :  { %738 = vmatmul.mubr.msk.bf16.vlgmr.msra.gmra.mrb[0].mxu1 %vm173_vm1, %v220_v19 }
 0x15e   :  { %751 = vmatprep.mubr.msk.bf16.mxu1 %vm987_vm0, %v986_v0  ;;  %750 = vmatpush3.bf16.msra.mxu1 %v801_v43 }
 0x15f   :  { %763 = vmatprep.subr.bf16.mxu1 %v986_v0 }
 0x230   :  { %v297_v25 = vpop.f32.mrb[0].mxu1 }
 0x231   :  { %v298_v26 = vadd.f32 %v671_v24, %v297_v25  ;;  %v739_v27 = vpop.f32.mrb[1].mxu1 }
 0x232   :  { %v300_v28 = vpop.f32.mrb[2].mxu1 }
 0x233   :  { %v301_v29 = vadd.f32 %v671_v24, %v300_v28  ;;  %v740_v30 = vpop.f32.mrb[3].mxu1  ;;  %v304_v31 = vmax.f32 %v298_v26, 0.0 }
 0x235   :  { %v305_v32 = vmax.f32 %v301_v29, 0.0 }
 0x237   :  { %v306_v33 = vpack.c.bf16 %v305_v32, %v304_v31 }
 0x239   :  { %746 = vmatmul.mubr.msk.bf16.vlgmr.msra.gmra.mrb[4].mxu0 %vm330_vm2, %v306_v33 }
 0x23a   :  { %759 = vmatprep.mubr.msk.bf16.mxu0 %vm987_vm0, %v986_v0  ;;  %756 = vmatpush3.bf16.msra.mxu0 %v802_v55 }
 0x23b   :  { %757 = vmatprep.subr.bf16.mxu0 %v986_v0 }
 0x23e   :  { %758 = vmatpush3.bf16.msra.mxu0 %v803_v56 }
 0x30c   :  { %v368_v35 = vpop.f32.mrb[4].mxu0 }
 0x30d   :  { %v369_v36 = vadd.f32 %v677_v34, %v368_v35  ;;  %v747_v37 = vpop.f32.mrb[5].mxu0 }
 0x30e   :  { %v371_v38 = vpop.f32.mrb[6].mxu0 }
 0x30f   :  { %v375_v39 = vmul.f32 1.442695, %v369_v36  ;;  %v372_v40 = vadd.f32 %v677_v34, %v371_v38  ;;  %620 = vrot.lane.b32.xlu0 %v369_v36, %s1283_s16  ;;  %v748_v41 = vpop.f32.mrb[7].mxu0 }
 0x311   :  { %808 = vpow2.f32 %v375_v39  ;;  %v377_v42 = vmul.f32 1.442695, %v372_v40 }
 0x313   :  { %810 = vpow2.f32 %v377_v42 }
 0x31b   :  { %v809_v45 = vpop.eup %808 }
 0x31c   :  { %v389_v46 = vmul.f32 %v809_v45, %v384_v44  ;;  %628 = vrot.lane.b32.xlu0 %v809_v45, %s1283_s16 }
 0x31d   :  { %v811_v47 = vpop.eup %810 }
 0x31e   :  { %393 = vrot.lane.b32.xlu1 %v389_v46, %s989_s4  ;;  %v390_v49 = vmul.f32 %v811_v47, %v386_v48 }
 0x322   :  { %395 = vrot.lane.b32.xlu1 %v390_v49, %s989_s4 }
 0x326   :  { %622 = vrot.lane.b32.xlu1 %v372_v40, %s1283_s16 }
 0x32a   :  { %630 = vrot.lane.b32.xlu1 %v811_v47, %s1283_s16 }
 0x381   :  { %v621_v18 = vpop.permute.xlu0 %620 }
 0x38e   :  { %v629_v24 = vpop.permute.xlu0 %628 }
 0x390   :  { %v394_v50 = vpop.permute.xlu1 %393 }
 0x391   :  { %v399_v52 = vadd.f32 %v394_v50, %v369_v36 }
 0x394   :  { %v396_v51 = vpop.permute.xlu1 %395 }
 0x395   :  { %v400_v53 = vadd.f32 %v396_v51, %v372_v40 }
 0x397   :  { %v401_v54 = vpack.c.bf16 %v400_v53, %v399_v52 }
 0x398   :  { %v623_v19 = vpop.permute.xlu1 %622 }
 0x399   :  { %752 = vmatmul.mubr.msk.bf16.vlgmr.msra.gmra.mrb[4].mxu1 %vm417_vm3, %v401_v54 }
 0x39a   :  { %771 = vmatprep.mubr.msk.bf16.mxu1 %vm987_vm0, %v986_v0  ;;  %764 = vmatpush3.bf16.msra.mxu1 %v804_v57 }
 0x39b   :  { %765 = vmatprep.subr.bf16.mxu1 %v986_v0 }
 0x39c   :  { %v631_v29 = vpop.permute.xlu1 %630 }
 0x39e   :  { %766 = vmatpush3.bf16.msra.mxu1 %v805_v58 }
 0x39f   :  { %767 = vmatprep.subr.bf16.mxu1 %v986_v0 }
 0x3a2   :  { %768 = vmatpush3.bf16.msra.mxu1 %v806_v6 }
 0x3a3   :  { %769 = vmatprep.subr.bf16.mxu1 %v986_v0  ;;  %v688_v0 = vld [vmem:[%s1279_s13] ss:$0 sm:$0xff]  ;;  %s944_s13 = scalar_lea.vmem %s650_s12, 256 }
 0x3a4   :  { %p945_p6 = scmp.ne.s32.totalorder %s650_s12, %s944_s13  ;;  %p950_p8 = scmp.lt.s32.totalorder %s944_s13, %s944_s13 }
 0x3a6   :  { %770 = vmatpush3.bf16.msra.mxu1 %v807_v7  ;;  %p951_p9 = por %p950_p8, %p949_p7 }
 0x3a8   :  { %p952_p10 = pnand %p951_p9, %p945_p6 }
 0x46c   :  { %v455_v60 = vpop.f32.mrb[4].mxu1 }
 0x46d   :  { %v456_v61 = vadd.f32 %v681_v59, %v455_v60  ;;  %v753_v62 = vpop.f32.mrb[5].mxu1 }
 0x46e   :  { %v458_v63 = vpop.f32.mrb[6].mxu1 }
 0x46f   :  { %v459_v1 = vadd.f32 %v681_v59, %v458_v63  ;;  %v754_v2 = vpop.f32.mrb[7].mxu1  ;;  %v462_v3 = vmax.f32 %v456_v61, 0.0 }
 0x471   :  { %v463_v4 = vmax.f32 %v459_v1, 0.0 }
 0x473   :  { %v464_v5 = vpack.c.bf16 %v463_v4, %v462_v3 }
 0x475   :  { %760 = vmatmul.mubr.msk.bf16.vlgmr.msra.gmra.mrb[8].mxu0 %vm330_vm2, %v464_v5 }
 0x548   :  { %v525_v9 = vpop.f32.mrb[8].mxu0 }
 0x549   :  { %v526_v10 = vadd.f32 %v684_v8, %v525_v9  ;;  %v761_v11 = vpop.f32.mrb[9].mxu0 }
 0x54a   :  { %v528_v12 = vpop.f32.mrb[10].mxu0 }
 0x54b   :  { %v529_v13 = vadd.f32 %v684_v8, %v528_v12  ;;  %v762_v14 = vpop.f32.mrb[11].mxu0  ;;  %v532_v15 = vmax.f32 %v526_v10, 0.0 }
 0x54d   :  { %v533_v16 = vmax.f32 %v529_v13, 0.0 }
 0x54f   :  { %v534_v17 = vpack.c.bf16 %v533_v16, %v532_v15 }
 0x551   :  { %772 = vmatmul.mubr.msk.bf16.vlgmr.msra.gmra.mrb[8].mxu1 %vm173_vm1, %v534_v17 }
 0x624   :  { %v611_v20 = vpop.f32.mrb[8].mxu1 }
 0x625   :  { %v612_v21 = vadd.f32 %v688_v0, %v611_v20  ;;  %v773_v22 = vpop.f32.mrb[9].mxu1 }
 0x626   :  { %v614_v23 = vpop.f32.mrb[10].mxu1 }
 0x627   :  { %v634_v25 = vsel %vm173_vm1, %v612_v21, %v621_v18  ;;  %v615_v26 = vadd.f32 %v688_v0, %v614_v23  ;;  %v774_v27 = vpop.f32.mrb[11].mxu1 }
 0x628   :  { %v637_v28 = vsel %vm636_vm4, %v634_v25, %v629_v24 }
 0x629   :  { %v635_v30 = vsel %vm173_vm1, %v615_v26, %v623_v19  ;;  %v640_v31 = vsel %vm639_vm5, %v637_v28, 0.0 }
 0x62a   :  { %v638_v32 = vsel %vm636_vm4, %v635_v30, %v631_v29  ;;  %642 = vst [vmem:[#allocation13] sm:$0xff] %v640_v31 }
 0x62b   :  { %v641_v33 = vsel %vm639_vm5, %v638_v32, 0.0 }
 0x62c   :  { %643 = vst [vmem:[#allocation13 + $0x8] sm:$0xff] %v641_v33 }
 0x62d   :  { %955 = shalt.err (!%p952_p10)
}
 0x62e   :  { %s956_s17 = scalar_lea.hbm %s1280_s14, 256 }
 0x62f   :  { %p957_p11 = scmp.ne.s32.totalorder %s1280_s14, %s956_s17  ;;  %p960_p12 = scmp.lt.u32.totalorder %s956_s17, %s1280_s14 }
 0x631   :  { %p962_p13 = pnand %p960_p12, %p957_p11 }
 0x633   :  { %965 = shalt.err (!%p962_p13)
}
 0x634   :  { %655 = dma.vmem_to_hbm [thread:$0]  %s650_s12, 256, %s1280_s14, [#allocation4], %s980_s5, %s980_s5, %s981_s30  }
 0x635   :  { %974 = dma.done.wait [#allocation4], 256  }
 0x636   :  { %975 = vsyncadd [#allocation4], 4294967040 }
 0x637   :  { %659 = vsyncpa [#allocation3], 1 }
 0x638   :  { %660 = vsyncpa [#allocation6], 1 }
 0x639   :  { %661 = vsyncpa [#allocation9], 1 }
 0x63a   :  { %662 = vsyncpa [#allocation12], 1 }
 0x63b   :  { %663 = vsyncpa [#allocation4], 1 }

</bundles_post_ra>
